<compile_context>
chip_gen: v7x
topology: tpu7x:2x2x1
jax: 0.10.0
libtpu: 0.0.40
codegen_flags: <defaults>
</compile_context>

<pallas_src>
import jax
import jax.numpy as jnp
from jax.experimental import pallas as pl
from jax.experimental.pallas import tpu as pltpu

EDGE_TILE_MAX = 2048    # cap on edge rows per grid step
NODE_TILE_MAX = 2048    # cap on agent rows per grid step
MIN_GRID_STEPS = 8      # target grid length (keeps both v7x TCs busy)
VMEM_LIMIT = 32 * 1024 * 1024


# ----------------------------------------------------------------------------
# helpers
# ----------------------------------------------------------------------------
def _round_up(x, m):
    return ((x + m - 1) // m) * m


def _pick_tile(n, max_tile, min_steps=MIN_GRID_STEPS):
    """Row tile + padded row count for a 1-D grid over `n` rows.

    Targets >= min_steps grid steps (megacore sharding + pipeline depth),
    caps the tile to bound VMEM, and shrinks the tile for small n so padding
    waste stays small (no more E=1025 -> 2048 blow-ups).
    """
    n = max(int(n), 1)
    n8 = _round_up(n, 8)
    tile = _round_up(pl.cdiv(n8, min_steps), 8)
    tile = max(8, min(int(max_tile), tile))
    return tile, _round_up(n8, tile)


def _group_norm(x, w, b, eps=1e-5):
    # GroupNorm(1, C) on (rows, C): per-row mean/var over the feature axis.
    mu = jnp.mean(x, axis=-1, keepdims=True)
    xc = x - mu
    var = jnp.mean(xc * xc, axis=-1, keepdims=True)
    return xc * jax.lax.rsqrt(var + eps) * w + b


def _gn_host(x, w, b, eps=1e-5):
    mu = x.mean(-1, keepdims=True)
    xc = x - mu
    var = (xc * xc).mean(-1, keepdims=True)
    return xc / jnp.sqrt(var + eps) * w + b


# ----------------------------------------------------------------------------
# Kernel 1: per-edge feature path (tiled over edges)
#   dist  = ReLU(d @ Wd1 + bd1) ; dist  = ReLU(GN(dist @ Wd2))
#   query = ReLU(GN(agts[hi] @ Wq))
#   ctx_e = ReLU(GN(cat(dist, query, ctx[wi]) @ Wc1)) @ Wc2
# ----------------------------------------------------------------------------
def edge_kernel(dist_ref, agts_hi_ref, ctx_wi_ref,
                wd1_ref, bd1_ref, wd2_ref, gnd_w_ref, gnd_b_ref,
                wq_ref, gnq_w_ref, gnq_b_ref,
                wc1_ref, gnc_w_ref, gnc_b_ref, wc2_ref,
                out_ref):
    n_ctx = wd2_ref.shape[0]

    d = dist_ref[...]                                            # (TE, 2)
    # self.dist[0]: Linear(2, n_ctx) + bias, ReLU.  K=2 is a degenerate MXU
    # matmul -> do it on the VPU as two broadcast multiplies.
    h_d = (d[:, 0:1] * wd1_ref[0:1, :] +
           d[:, 1:2] * wd1_ref[1:2, :] + bd1_ref[...])
    h_d = jnp.maximum(h_d, 0.0)
    # self.dist[2]: Linear(n_ctx, n_ctx, GN, act=True)
    h_d = jnp.dot(h_d, wd2_ref[...], preferred_element_type=jnp.float32)
    h_d = jnp.maximum(_group_norm(h_d, gnd_w_ref[...], gnd_b_ref[...]), 0.0)

    # self.query: Linear(n_agt, n_ctx, GN, act=True)
    q = jnp.dot(agts_hi_ref[...], wq_ref[...],
                preferred_element_type=jnp.float32)
    q = jnp.maximum(_group_norm(q, gnq_w_ref[...], gnq_b_ref[...]), 0.0)

    # concat([h_d, q, ctx_wi]) @ Wc1 == sum of three matmuls against static
    # row-slices of Wc1 (no (TE, 3*n_ctx) concat buffer in VMEM).
    wc1 = wc1_ref[...]
    h = jnp.dot(h_d, wc1[0:n_ctx, :], preferred_element_type=jnp.float32)
    h = h + jnp.dot(q, wc1[n_ctx:2 * n_ctx, :],
                    preferred_element_type=jnp.float32)
    h = h + jnp.dot(ctx_wi_ref[...], wc1[2 * n_ctx:3 * n_ctx, :],
                    preferred_element_type=jnp.float32)
    h = jnp.maximum(_group_norm(h, gnc_w_ref[...], gnc_b_ref[...]), 0.0)
    out_ref[...] = jnp.dot(h, wc2_ref[...], preferred_element_type=jnp.float32)


# ----------------------------------------------------------------------------
# Kernel 2: per-node path (tiled over nodes)
#   h = agts @ Wagt + scattered_ctx ; h = ReLU(GN_norm(h))
#   h = GN_lin(h @ Wl) ; out = h + res          (no final ReLU on this path)
# ----------------------------------------------------------------------------
def agt_kernel(agts_ref, scat_ref,
               wagt_ref, norm_w_ref, norm_b_ref,
               wl_ref, gnl_w_ref, gnl_b_ref,
               out_ref):
    res = agts_ref[...]
    h = jnp.dot(res, wagt_ref[...], preferred_element_type=jnp.float32)
    h = h + scat_ref[...]                        # index_add_ result (glue)
    h = jnp.maximum(_group_norm(h, norm_w_ref[...], norm_b_ref[...]), 0.0)
    h = jnp.dot(h, wl_ref[...], preferred_element_type=jnp.float32)
    h = _group_norm(h, gnl_w_ref[...], gnl_b_ref[...])   # act=False
    out_ref[...] = h + res


# ----------------------------------------------------------------------------
# jitted core: gathers + edge kernel + sorted segment reduction + node kernel
# ----------------------------------------------------------------------------
@jax.jit
def _att_core(params, agts, ctx, agt_ctrs_cat, ctx_ctrs_cat, hi, wi):
    N, n_agt = agts.shape
    n_ctx = ctx.shape[1]
    E = hi.shape[0]

    TE, Ep = _pick_tile(E, EDGE_TILE_MAX)
    pad = Ep - E
    # Pad the index arrays, not the gathered data: gathers land already
    # (Ep, C)-shaped, and padded rows get an out-of-range segment id so the
    # reduction drops them (no _pad_rows / [:E] HBM copies).
    hi_g = jnp.pad(hi, (0, pad))                       # 0 -> valid gather row
    wi_g = jnp.pad(wi, (0, pad))
    hi_s = jnp.pad(hi, (0, pad), constant_values=N)    # N -> dropped in reduce

    dist_vec = (jnp.take(agt_ctrs_cat, hi_g, axis=0)
                - jnp.take(ctx_ctrs_cat, wi_g, axis=0))          # (Ep, 2)
    agts_hi = jnp.take(agts, hi_g, axis=0)                       # (Ep, n_agt)
    ctx_wi = jnp.take(ctx, wi_g, axis=0)                         # (Ep, n_ctx)

    edge_weights = (params["wd1"], params["bd1"], params["wd2"],
                    params["gnd_w"], params["gnd_b"],
                    params["wq"], params["gnq_w"], params["gnq_b"],
                    params["wc1"], params["gnc_w"], params["gnc_b"],
                    params["wc2"])

    edge_in_specs = (
        [pl.BlockSpec((TE, 2), lambda i: (i, 0)),
         pl.BlockSpec((TE, n_agt), lambda i: (i, 0)),
         pl.BlockSpec((TE, n_ctx), lambda i: (i, 0))]
        + [pl.BlockSpec(w.shape, lambda i: (0, 0)) for w in edge_weights])

    edge_cost = pl.CostEstimate(
        flops=int(Ep) * (2 * n_ctx * n_ctx + 2 * n_agt * n_ctx
                         + 2 * 3 * n_ctx * n_agt + 2 * n_agt * n_agt
                         + 8 * n_ctx),
        transcendentals=3 * int(Ep),
        bytes_accessed=4 * int(Ep) * (2 + n_agt + n_ctx + n_agt)
                       + 4 * sum(int(w.size) for w in edge_weights),
    )

    # ---- Pallas kernel 1: per-edge MLPs (grid over edge tiles) ----
    ctx_out = pl.pallas_call(
        edge_kernel,
        out_shape=jax.ShapeDtypeStruct((Ep, n_agt), jnp.float32),
        grid=(Ep // TE,),
        in_specs=edge_in_specs,
        out_specs=pl.BlockSpec((TE, n_agt), lambda i: (i, 0)),
        compiler_params=pltpu.CompilerParams(
            dimension_semantics=("parallel",),
            vmem_limit_bytes=VMEM_LIMIT),
        cost_estimate=edge_cost,
    )(dist_vec, agts_hi, ctx_wi, *edge_weights)

    # ---- index_add_ over hi as a sorted-segment reduction ----
    # hi is globally sorted by construction of the edge loop; padded ids == N
    # are out of range and dropped.
    # TODO(synk): scalar-prefetch per-tile segment offsets and accumulate
    # inside edge_kernel so ctx_out never round-trips through HBM.
    scattered = jax.ops.segment_sum(ctx_out, hi_s, num_segments=N,
                                    indices_are_sorted=True)

    # ---- Pallas kernel 2: per-node path (grid over node tiles) ----
    TN, Np = _pick_tile(N, NODE_TILE_MAX)
    agts_p = jnp.pad(agts, ((0, Np - N), (0, 0)))
    scat_p = jnp.pad(scattered, ((0, Np - N), (0, 0)))

    node_weights = (params["wagt"], params["norm_w"], params["norm_b"],
                    params["wl"], params["gnl_w"], params["gnl_b"])
    node_in_specs = (
        [pl.BlockSpec((TN, n_agt), lambda i: (i, 0)),
         pl.BlockSpec((TN, n_agt), lambda i: (i, 0))]
        + [pl.BlockSpec(w.shape, lambda i: (0, 0)) for w in node_weights])

    node_cost = pl.CostEstimate(
        flops=int(Np) * 4 * n_agt * n_agt,
        transcendentals=2 * int(Np),
        bytes_accessed=4 * int(Np) * 3 * n_agt
                       + 4 * sum(int(w.size) for w in node_weights),
    )

    out = pl.pallas_call(
        agt_kernel,
        out_shape=jax.ShapeDtypeStruct((Np, n_agt), jnp.float32),
        grid=(Np // TN,),
        in_specs=node_in_specs,
        out_specs=pl.BlockSpec((TN, n_agt), lambda i: (i, 0)),
        compiler_params=pltpu.CompilerParams(
            dimension_semantics=("parallel",),
            vmem_limit_bytes=VMEM_LIMIT),
        cost_estimate=node_cost,
    )(agts_p, scat_p, *node_weights)
    return out[:N]


# ----------------------------------------------------------------------------
# parameter construction (deterministic, synthetic)
# ----------------------------------------------------------------------------
def init_params(key, n_agt, n_ctx):
    ks = jax.random.split(key, 16)
    s = 0.1
    return {
        # dist branch
        "wd1": jax.random.normal(ks[0], (2, n_ctx), jnp.float32) * s,
        "bd1": jax.random.normal(ks[1], (1, n_ctx), jnp.float32) * s,
        "wd2": jax.random.normal(ks[2], (n_ctx, n_ctx), jnp.float32) * s,
        "gnd_w": 1.0 + jax.random.normal(ks[3], (1, n_ctx), jnp.float32) * s,
        "gnd_b": jax.random.normal(ks[4], (1, n_ctx), jnp.float32) * s,
        # query branch
        "wq": jax.random.normal(ks[5], (n_agt, n_ctx), jnp.float32) * s,
        "gnq_w": 1.0 + jax.random.normal(ks[6], (1, n_ctx), jnp.float32) * s,
        "gnq_b": jax.random.normal(ks[7], (1, n_ctx), jnp.float32) * s,
        # ctx MLP
        "wc1": jax.random.normal(ks[8], (3 * n_ctx, n_agt), jnp.float32) * s,
        "gnc_w": 1.0 + jax.random.normal(ks[9], (1, n_agt), jnp.float32) * s,
        "gnc_b": jax.random.normal(ks[10], (1, n_agt), jnp.float32) * s,
        "wc2": jax.random.normal(ks[11], (n_agt, n_agt), jnp.float32) * s,
        # node path
        "wagt": jax.random.normal(ks[12], (n_agt, n_agt), jnp.float32) * s,
        "norm_w": jnp.ones((1, n_agt), jnp.float32),
        "norm_b": jnp.zeros((1, n_agt), jnp.float32),
        "wl": jax.random.normal(ks[13], (n_agt, n_agt), jnp.float32) * s,
        "gnl_w": 1.0 + jax.random.normal(ks[14], (1, n_agt), jnp.float32) * s,
        "gnl_b": jax.random.normal(ks[15], (1, n_agt), jnp.float32) * s,
    }


# ----------------------------------------------------------------------------
# forward pass (glue = eager edge construction; hot path = jitted _att_core)
# ----------------------------------------------------------------------------
def att_forward(params, agts, agt_idcs, agt_ctrs, ctx, ctx_idcs, ctx_ctrs,
                dist_th):
    # ---- edge construction (data-dependent torch.nonzero): eager JAX glue ----
    # TODO(synk): bucket E to a small static set + mask (jnp.nonzero(size=...))
    # so this loop can move under jit; the eager nonzero / int() host syncs
    # still serialize dispatch for small graphs.
    batch_size = len(agt_idcs)
    hi_list, wi_list = [], []
    hi_count, wi_count = 0, 0
    for i in range(batch_size):
        d = agt_ctrs[i][:, None, :] - ctx_ctrs[i][None, :, :]
        d = jnp.sqrt((d ** 2).sum(-1))
        ii, jj = jnp.nonzero(d <= dist_th)     # eager; dynamic shape in glue
        if ii.shape[0] == 0:
            continue
        hi_list.append(ii + hi_count)
        wi_list.append(jj + wi_count)
        hi_count += int(agt_idcs[i].shape[0])
        wi_count += int(ctx_idcs[i].shape[0])

    if ctx.shape[0] == 0 or not hi_list:
        # Empty-context fallback of Att.forward (skips self.norm, final ReLU).
        # TODO(synk): rare path kept in plain JAX rather than a Pallas kernel.
        a = jnp.maximum(agts @ params["wagt"], 0.0)
        a = _gn_host(a @ params["wl"], params["gnl_w"], params["gnl_b"])
        return jnp.maximum(a + agts, 0.0)

    hi = jnp.concatenate(hi_list, 0)
    wi = jnp.concatenate(wi_list, 0)
    agt_ctrs_cat = jnp.concatenate(agt_ctrs, 0)
    ctx_ctrs_cat = jnp.concatenate(ctx_ctrs, 0)

    return _att_core(params, agts, ctx, agt_ctrs_cat, ctx_ctrs_cat, hi, wi)


# ----------------------------------------------------------------------------
# pure-JAX reference (mirrors the PyTorch forward) for a correctness check
# ----------------------------------------------------------------------------
def att_forward_ref(params, agts, agt_idcs, agt_ctrs, ctx, ctx_idcs, ctx_ctrs,
                    dist_th):
    batch_size = len(agt_idcs)
    hi_list, wi_list = [], []
    hi_count, wi_count = 0, 0
    for i in range(batch_size):
        d = agt_ctrs[i][:, None, :] - ctx_ctrs[i][None, :, :]
        d = jnp.sqrt((d ** 2).sum(-1))
        ii, jj = jnp.nonzero(d <= dist_th)
        if ii.shape[0] == 0:
            continue
        hi_list.append(ii + hi_count)
        wi_list.append(jj + wi_count)
        hi_count += int(agt_idcs[i].shape[0])
        wi_count += int(ctx_idcs[i].shape[0])
    hi = jnp.concatenate(hi_list, 0)
    wi = jnp.concatenate(wi_list, 0)
    a_ctrs = jnp.concatenate(agt_ctrs, 0)
    c_ctrs = jnp.concatenate(ctx_ctrs, 0)

    d = a_ctrs[hi] - c_ctrs[wi]
    h_d = jnp.maximum(d @ params["wd1"] + params["bd1"], 0.0)
    h_d = jnp.maximum(_gn_host(h_d @ params["wd2"],
                               params["gnd_w"], params["gnd_b"]), 0.0)
    q = jnp.maximum(_gn_host(agts[hi] @ params["wq"],
                             params["gnq_w"], params["gnq_b"]), 0.0)
    cat = jnp.concatenate([h_d, q, ctx[wi]], axis=-1)
    h = jnp.maximum(_gn_host(cat @ params["wc1"],
                             params["gnc_w"], params["gnc_b"]), 0.0)
    ctx_e = h @ params["wc2"]

    res = agts
    a = agts @ params["wagt"]
    a = a.at[hi].add(ctx_e)
    a = jnp.maximum(_gn_host(a, params["norm_w"], params["norm_b"]), 0.0)
    a = _gn_host(a @ params["wl"], params["gnl_w"], params["gnl_b"])
    return a + res


# ----------------------------------------------------------------------------
if __name__ == "__main__":
    n_agt, n_ctx = 32, 32
    agt_counts = [5, 3]      # 8 agent nodes total
    ctx_counts = [6, 10]     # 16 context nodes total
    dist_th = 2.0

    key = jax.random.PRNGKey(0)
    kp, ka, kc, kac, kcc = jax.random.split(key, 5)
    params = init_params(kp, n_agt, n_ctx)

    N = sum(agt_counts)
    M = sum(ctx_counts)
    agts = jax.random.normal(ka, (N, n_agt), jnp.float32)
    ctx = jax.random.normal(kc, (M, n_ctx), jnp.float32)

    a_ctr_all = jax.random.uniform(kac, (N, 2), jnp.float32, -1.0, 1.0)
    c_ctr_all = jax.random.uniform(kcc, (M, 2), jnp.float32, -1.0, 1.0)

    agt_ctrs, ctx_ctrs, agt_idcs, ctx_idcs = [], [], [], []
    a_off, c_off = 0, 0
    for na, nc in zip(agt_counts, ctx_counts):
        agt_ctrs.append(a_ctr_all[a_off:a_off + na])
        ctx_ctrs.append(c_ctr_all[c_off:c_off + nc])
        agt_idcs.append(jnp.arange(a_off, a_off + na))
        ctx_idcs.append(jnp.arange(c_off, c_off + nc))
        a_off += na
        c_off += nc

    out = att_forward(params, agts, agt_idcs, agt_ctrs,
                      ctx, ctx_idcs, ctx_ctrs, dist_th)
    out = jax.block_until_ready(out)

    ref = att_forward_ref(params, agts, agt_idcs, agt_ctrs,
                          ctx, ctx_idcs, ctx_ctrs, dist_th)
    assert out.shape == (N, n_agt)
    assert jnp.allclose(out, ref, atol=2e-4, rtol=2e-4), "mismatch vs reference"
    print("KERNEL_OK")
</pallas_src>

<mosaic_0001>
module attributes {stable_mosaic.version = 11 : i64} {
  func.func @edge_kernel(%arg0: i32, %arg1: memref<8x2xf32, #tpu.memory_space<vmem>>, %arg2: memref<8x32xf32, #tpu.memory_space<vmem>>, %arg3: memref<8x32xf32, #tpu.memory_space<vmem>>, %arg4: memref<2x32xf32, #tpu.memory_space<vmem>>, %arg5: memref<1x32xf32, #tpu.memory_space<vmem>>, %arg6: memref<32x32xf32, #tpu.memory_space<vmem>>, %arg7: memref<1x32xf32, #tpu.memory_space<vmem>>, %arg8: memref<1x32xf32, #tpu.memory_space<vmem>>, %arg9: memref<32x32xf32, #tpu.memory_space<vmem>>, %arg10: memref<1x32xf32, #tpu.memory_space<vmem>>, %arg11: memref<1x32xf32, #tpu.memory_space<vmem>>, %arg12: memref<96x32xf32, #tpu.memory_space<vmem>>, %arg13: memref<1x32xf32, #tpu.memory_space<vmem>>, %arg14: memref<1x32xf32, #tpu.memory_space<vmem>>, %arg15: memref<32x32xf32, #tpu.memory_space<vmem>>, %arg16: memref<8x32xf32, #tpu.memory_space<vmem>>) attributes {dimension_semantics = [#tpu.dimension_semantics<parallel>], iteration_bounds = array<i64: 8>, scalar_prefetch = 0 : i64, scratch_operands = 0 : i64, tpu.core_type = #tpu.core_type<tc>, window_params = [{transform_indices = @transform_0, window_bounds = array<i64: 8, 2>}, {transform_indices = @transform_1, window_bounds = array<i64: 8, 32>}, {transform_indices = @transform_2, window_bounds = array<i64: 8, 32>}, {pipeline_mode = #tpu.pipeline_mode<synchronous>, transform_indices = @transform_3, window_bounds = array<i64: 2, 32>}, {pipeline_mode = #tpu.pipeline_mode<synchronous>, transform_indices = @transform_4, window_bounds = array<i64: 1, 32>}, {pipeline_mode = #tpu.pipeline_mode<synchronous>, transform_indices = @transform_5, window_bounds = array<i64: 32, 32>}, {pipeline_mode = #tpu.pipeline_mode<synchronous>, transform_indices = @transform_6, window_bounds = array<i64: 1, 32>}, {pipeline_mode = #tpu.pipeline_mode<synchronous>, transform_indices = @transform_7, window_bounds = array<i64: 1, 32>}, {pipeline_mode = #tpu.pipeline_mode<synchronous>, transform_indices = @transform_8, window_bounds = array<i64: 32, 32>}, {pipeline_mode = #tpu.pipeline_mode<synchronous>, transform_indices = @transform_9, window_bounds = array<i64: 1, 32>}, {pipeline_mode = #tpu.pipeline_mode<synchronous>, transform_indices = @transform_10, window_bounds = array<i64: 1, 32>}, {pipeline_mode = #tpu.pipeline_mode<synchronous>, transform_indices = @transform_11, window_bounds = array<i64: 96, 32>}, {pipeline_mode = #tpu.pipeline_mode<synchronous>, transform_indices = @transform_12, window_bounds = array<i64: 1, 32>}, {pipeline_mode = #tpu.pipeline_mode<synchronous>, transform_indices = @transform_13, window_bounds = array<i64: 1, 32>}, {pipeline_mode = #tpu.pipeline_mode<synchronous>, transform_indices = @transform_14, window_bounds = array<i64: 32, 32>}, {transform_indices = @transform_15, window_bounds = array<i64: 8, 32>}]} {
    %c0 = arith.constant 0 : index
    %c0_0 = arith.constant 0 : index
    %0 = vector.load %arg1[%c0, %c0_0] : memref<8x2xf32, #tpu.memory_space<vmem>>, vector<8x2xf32>
    %1 = vector.extract_strided_slice %0 {offsets = [0, 0], sizes = [8, 1], strides = [1, 1]} : vector<8x2xf32> to vector<8x1xf32>
    %c0_1 = arith.constant 0 : index
    %c0_2 = arith.constant 0 : index
    %2 = vector.load %arg4[%c0_1, %c0_2] : memref<2x32xf32, #tpu.memory_space<vmem>>, vector<1x32xf32>
    %3 = vector.broadcast %1 : vector<8x1xf32> to vector<8x32xf32>
    %4 = vector.broadcast %2 : vector<1x32xf32> to vector<8x32xf32>
    %5 = arith.mulf %3, %4 : vector<8x32xf32>
    %6 = vector.extract_strided_slice %0 {offsets = [0, 1], sizes = [8, 1], strides = [1, 1]} : vector<8x2xf32> to vector<8x1xf32>
    %c1 = arith.constant 1 : index
    %c0_3 = arith.constant 0 : index
    %7 = vector.load %arg4[%c1, %c0_3] : memref<2x32xf32, #tpu.memory_space<vmem>>, vector<1x32xf32>
    %8 = vector.broadcast %6 : vector<8x1xf32> to vector<8x32xf32>
    %9 = vector.broadcast %7 : vector<1x32xf32> to vector<8x32xf32>
    %10 = arith.mulf %8, %9 : vector<8x32xf32>
    %11 = arith.addf %5, %10 : vector<8x32xf32>
    %c0_4 = arith.constant 0 : index
    %c0_5 = arith.constant 0 : index
    %12 = vector.load %arg5[%c0_4, %c0_5] : memref<1x32xf32, #tpu.memory_space<vmem>>, vector<1x32xf32>
    %13 = vector.broadcast %12 : vector<1x32xf32> to vector<8x32xf32>
    %14 = arith.addf %11, %13 : vector<8x32xf32>
    %cst = arith.constant 0.000000e+00 : f32
    %15 = vector.broadcast %cst : f32 to vector<8x32xf32>
    %16 = arith.maximumf %14, %15 : vector<8x32xf32>
    %c0_6 = arith.constant 0 : index
    %c0_7 = arith.constant 0 : index
    %17 = vector.load %arg6[%c0_6, %c0_7] : memref<32x32xf32, #tpu.memory_space<vmem>>, vector<32x32xf32>
    %cst_8 = arith.constant dense<0.000000e+00> : vector<8x32xf32>
    %18 = tpu.matmul %16, %17, %cst_8 {dimension_numbers = #tpu.dot_dimension_numbers<[1], [0], [0], [1], [0, 0, 1, 1], [], []>} : vector<8x32xf32>, vector<32x32xf32>, vector<8x32xf32> -> vector<8x32xf32>
    %c0_9 = arith.constant 0 : index
    %c0_10 = arith.constant 0 : index
    %19 = vector.load %arg7[%c0_9, %c0_10] : memref<1x32xf32, #tpu.memory_space<vmem>>, vector<1x32xf32>
    %c0_11 = arith.constant 0 : index
    %c0_12 = arith.constant 0 : index
    %20 = vector.load %arg8[%c0_11, %c0_12] : memref<1x32xf32, #tpu.memory_space<vmem>>, vector<1x32xf32>
    %cst_13 = arith.constant dense<0.000000e+00> : vector<8xf32>
    %21 = vector.multi_reduction <add>, %18, %cst_13 [1] : vector<8x32xf32> to vector<8xf32>
    %22 = vector.shape_cast %21 : vector<8xf32> to vector<8x1xf32>
    %cst_14 = arith.constant 3.200000e+01 : f32
    %23 = vector.broadcast %cst_14 : f32 to vector<8x1xf32>
    %24 = arith.divf %22, %23 : vector<8x1xf32>
    %25 = vector.broadcast %24 : vector<8x1xf32> to vector<8x32xf32>
    %26 = arith.subf %18, %25 : vector<8x32xf32>
    %27 = arith.mulf %26, %26 : vector<8x32xf32>
    %cst_15 = arith.constant dense<0.000000e+00> : vector<8xf32>
    %28 = vector.multi_reduction <add>, %27, %cst_15 [1] : vector<8x32xf32> to vector<8xf32>
    %29 = vector.shape_cast %28 : vector<8xf32> to vector<8x1xf32>
    %cst_16 = arith.constant 3.200000e+01 : f32
    %30 = vector.broadcast %cst_16 : f32 to vector<8x1xf32>
    %31 = arith.divf %29, %30 : vector<8x1xf32>
    %cst_17 = arith.constant 9.99999974E-6 : f32
    %32 = vector.broadcast %cst_17 : f32 to vector<8x1xf32>
    %33 = arith.addf %31, %32 : vector<8x1xf32>
    %34 = math.rsqrt %33 : vector<8x1xf32>
    %35 = vector.broadcast %34 : vector<8x1xf32> to vector<8x32xf32>
    %36 = arith.mulf %26, %35 : vector<8x32xf32>
    %37 = vector.broadcast %19 : vector<1x32xf32> to vector<8x32xf32>
    %38 = arith.mulf %36, %37 : vector<8x32xf32>
    %39 = vector.broadcast %20 : vector<1x32xf32> to vector<8x32xf32>
    %40 = arith.addf %38, %39 : vector<8x32xf32>
    %cst_18 = arith.constant 0.000000e+00 : f32
    %41 = vector.broadcast %cst_18 : f32 to vector<8x32xf32>
    %42 = arith.maximumf %40, %41 : vector<8x32xf32>
    %c0_19 = arith.constant 0 : index
    %c0_20 = arith.constant 0 : index
    %43 = vector.load %arg2[%c0_19, %c0_20] : memref<8x32xf32, #tpu.memory_space<vmem>>, vector<8x32xf32>
    %c0_21 = arith.constant 0 : index
    %c0_22 = arith.constant 0 : index
    %44 = vector.load %arg9[%c0_21, %c0_22] : memref<32x32xf32, #tpu.memory_space<vmem>>, vector<32x32xf32>
    %cst_23 = arith.constant dense<0.000000e+00> : vector<8x32xf32>
    %45 = tpu.matmul %43, %44, %cst_23 {dimension_numbers = #tpu.dot_dimension_numbers<[1], [0], [0], [1], [0, 0, 1, 1], [], []>} : vector<8x32xf32>, vector<32x32xf32>, vector<8x32xf32> -> vector<8x32xf32>
    %c0_24 = arith.constant 0 : index
    %c0_25 = arith.constant 0 : index
    %46 = vector.load %arg10[%c0_24, %c0_25] : memref<1x32xf32, #tpu.memory_space<vmem>>, vector<1x32xf32>
    %c0_26 = arith.constant 0 : index
    %c0_27 = arith.constant 0 : index
    %47 = vector.load %arg11[%c0_26, %c0_27] : memref<1x32xf32, #tpu.memory_space<vmem>>, vector<1x32xf32>
    %cst_28 = arith.constant dense<0.000000e+00> : vector<8xf32>
    %48 = vector.multi_reduction <add>, %45, %cst_28 [1] : vector<8x32xf32> to vector<8xf32>
    %49 = vector.shape_cast %48 : vector<8xf32> to vector<8x1xf32>
    %cst_29 = arith.constant 3.200000e+01 : f32
    %50 = vector.broadcast %cst_29 : f32 to vector<8x1xf32>
    %51 = arith.divf %49, %50 : vector<8x1xf32>
    %52 = vector.broadcast %51 : vector<8x1xf32> to vector<8x32xf32>
    %53 = arith.subf %45, %52 : vector<8x32xf32>
    %54 = arith.mulf %53, %53 : vector<8x32xf32>
    %cst_30 = arith.constant dense<0.000000e+00> : vector<8xf32>
    %55 = vector.multi_reduction <add>, %54, %cst_30 [1] : vector<8x32xf32> to vector<8xf32>
    %56 = vector.shape_cast %55 : vector<8xf32> to vector<8x1xf32>
    %cst_31 = arith.constant 3.200000e+01 : f32
    %57 = vector.broadcast %cst_31 : f32 to vector<8x1xf32>
    %58 = arith.divf %56, %57 : vector<8x1xf32>
    %cst_32 = arith.constant 9.99999974E-6 : f32
    %59 = vector.broadcast %cst_32 : f32 to vector<8x1xf32>
    %60 = arith.addf %58, %59 : vector<8x1xf32>
    %61 = math.rsqrt %60 : vector<8x1xf32>
    %62 = vector.broadcast %61 : vector<8x1xf32> to vector<8x32xf32>
    %63 = arith.mulf %53, %62 : vector<8x32xf32>
    %64 = vector.broadcast %46 : vector<1x32xf32> to vector<8x32xf32>
    %65 = arith.mulf %63, %64 : vector<8x32xf32>
    %66 = vector.broadcast %47 : vector<1x32xf32> to vector<8x32xf32>
    %67 = arith.addf %65, %66 : vector<8x32xf32>
    %cst_33 = arith.constant 0.000000e+00 : f32
    %68 = vector.broadcast %cst_33 : f32 to vector<8x32xf32>
    %69 = arith.maximumf %67, %68 : vector<8x32xf32>
    %c0_34 = arith.constant 0 : index
    %c0_35 = arith.constant 0 : index
    %70 = vector.load %arg12[%c0_34, %c0_35] : memref<96x32xf32, #tpu.memory_space<vmem>>, vector<96x32xf32>
    %71 = vector.extract_strided_slice %70 {offsets = [0, 0], sizes = [32, 32], strides = [1, 1]} : vector<96x32xf32> to vector<32x32xf32>
    %cst_36 = arith.constant dense<0.000000e+00> : vector<8x32xf32>
    %72 = tpu.matmul %42, %71, %cst_36 {dimension_numbers = #tpu.dot_dimension_numbers<[1], [0], [0], [1], [0, 0, 1, 1], [], []>} : vector<8x32xf32>, vector<32x32xf32>, vector<8x32xf32> -> vector<8x32xf32>
    %73 = vector.extract_strided_slice %70 {offsets = [32, 0], sizes = [32, 32], strides = [1, 1]} : vector<96x32xf32> to vector<32x32xf32>
    %cst_37 = arith.constant dense<0.000000e+00> : vector<8x32xf32>
    %74 = tpu.matmul %69, %73, %cst_37 {dimension_numbers = #tpu.dot_dimension_numbers<[1], [0], [0], [1], [0, 0, 1, 1], [], []>} : vector<8x32xf32>, vector<32x32xf32>, vector<8x32xf32> -> vector<8x32xf32>
    %75 = arith.addf %72, %74 : vector<8x32xf32>
    %c0_38 = arith.constant 0 : index
    %c0_39 = arith.constant 0 : index
    %76 = vector.load %arg3[%c0_38, %c0_39] : memref<8x32xf32, #tpu.memory_space<vmem>>, vector<8x32xf32>
    %77 = vector.extract_strided_slice %70 {offsets = [64, 0], sizes = [32, 32], strides = [1, 1]} : vector<96x32xf32> to vector<32x32xf32>
    %cst_40 = arith.constant dense<0.000000e+00> : vector<8x32xf32>
    %78 = tpu.matmul %76, %77, %cst_40 {dimension_numbers = #tpu.dot_dimension_numbers<[1], [0], [0], [1], [0, 0, 1, 1], [], []>} : vector<8x32xf32>, vector<32x32xf32>, vector<8x32xf32> -> vector<8x32xf32>
    %79 = arith.addf %75, %78 : vector<8x32xf32>
    %c0_41 = arith.constant 0 : index
    %c0_42 = arith.constant 0 : index
    %80 = vector.load %arg13[%c0_41, %c0_42] : memref<1x32xf32, #tpu.memory_space<vmem>>, vector<1x32xf32>
    %c0_43 = arith.constant 0 : index
    %c0_44 = arith.constant 0 : index
    %81 = vector.load %arg14[%c0_43, %c0_44] : memref<1x32xf32, #tpu.memory_space<vmem>>, vector<1x32xf32>
    %cst_45 = arith.constant dense<0.000000e+00> : vector<8xf32>
    %82 = vector.multi_reduction <add>, %79, %cst_45 [1] : vector<8x32xf32> to vector<8xf32>
    %83 = vector.shape_cast %82 : vector<8xf32> to vector<8x1xf32>
    %cst_46 = arith.constant 3.200000e+01 : f32
    %84 = vector.broadcast %cst_46 : f32 to vector<8x1xf32>
    %85 = arith.divf %83, %84 : vector<8x1xf32>
    %86 = vector.broadcast %85 : vector<8x1xf32> to vector<8x32xf32>
    %87 = arith.subf %79, %86 : vector<8x32xf32>
    %88 = arith.mulf %87, %87 : vector<8x32xf32>
    %cst_47 = arith.constant dense<0.000000e+00> : vector<8xf32>
    %89 = vector.multi_reduction <add>, %88, %cst_47 [1] : vector<8x32xf32> to vector<8xf32>
    %90 = vector.shape_cast %89 : vector<8xf32> to vector<8x1xf32>
    %cst_48 = arith.constant 3.200000e+01 : f32
    %91 = vector.broadcast %cst_48 : f32 to vector<8x1xf32>
    %92 = arith.divf %90, %91 : vector<8x1xf32>
    %cst_49 = arith.constant 9.99999974E-6 : f32
    %93 = vector.broadcast %cst_49 : f32 to vector<8x1xf32>
    %94 = arith.addf %92, %93 : vector<8x1xf32>
    %95 = math.rsqrt %94 : vector<8x1xf32>
    %96 = vector.broadcast %95 : vector<8x1xf32> to vector<8x32xf32>
    %97 = arith.mulf %87, %96 : vector<8x32xf32>
    %98 = vector.broadcast %80 : vector<1x32xf32> to vector<8x32xf32>
    %99 = arith.mulf %97, %98 : vector<8x32xf32>
    %100 = vector.broadcast %81 : vector<1x32xf32> to vector<8x32xf32>
    %101 = arith.addf %99, %100 : vector<8x32xf32>
    %cst_50 = arith.constant 0.000000e+00 : f32
    %102 = vector.broadcast %cst_50 : f32 to vector<8x32xf32>
    %103 = arith.maximumf %101, %102 : vector<8x32xf32>
    %c0_51 = arith.constant 0 : index
    %c0_52 = arith.constant 0 : index
    %104 = vector.load %arg15[%c0_51, %c0_52] : memref<32x32xf32, #tpu.memory_space<vmem>>, vector<32x32xf32>
    %cst_53 = arith.constant dense<0.000000e+00> : vector<8x32xf32>
    %105 = tpu.matmul %103, %104, %cst_53 {dimension_numbers = #tpu.dot_dimension_numbers<[1], [0], [0], [1], [0, 0, 1, 1], [], []>} : vector<8x32xf32>, vector<32x32xf32>, vector<8x32xf32> -> vector<8x32xf32>
    %c0_54 = arith.constant 0 : index
    %c0_55 = arith.constant 0 : index
    %106 = vector.load %arg16[%c0_54, %c0_55] : memref<8x32xf32, #tpu.memory_space<vmem>>, vector<8x32xf32>
    tpu.vector_store %arg16[%c0_54, %c0_55], %105 {strides = array<i32>} : memref<8x32xf32, #tpu.memory_space<vmem>>, vector<8x32xf32>,
    return
  }
  func.func @transform_0(%arg0: i32) -> (i32, i32) {
    %c0_i32 = arith.constant 0 : i32
    %c0_i32_0 = arith.constant 0 : i32
    return %arg0, %c0_i32 : i32, i32
  }
  func.func @transform_1(%arg0: i32) -> (i32, i32) {
    %c0_i32 = arith.constant 0 : i32
    %c0_i32_0 = arith.constant 0 : i32
    return %arg0, %c0_i32 : i32, i32
  }
  func.func @transform_2(%arg0: i32) -> (i32, i32) {
    %c0_i32 = arith.constant 0 : i32
    %c0_i32_0 = arith.constant 0 : i32
    return %arg0, %c0_i32 : i32, i32
  }
  func.func @transform_3(%arg0: i32) -> (i32, i32) {
    %c0_i32 = arith.constant 0 : i32
    %c0_i32_0 = arith.constant 0 : i32
    %c0_i32_1 = arith.constant 0 : i32
    return %c0_i32, %c0_i32_0 : i32, i32
  }
  func.func @transform_4(%arg0: i32) -> (i32, i32) {
    %c0_i32 = arith.constant 0 : i32
    %c0_i32_0 = arith.constant 0 : i32
    %c0_i32_1 = arith.constant 0 : i32
    return %c0_i32, %c0_i32_0 : i32, i32
  }
  func.func @transform_5(%arg0: i32) -> (i32, i32) {
    %c0_i32 = arith.constant 0 : i32
    %c0_i32_0 = arith.constant 0 : i32
    %c0_i32_1 = arith.constant 0 : i32
    return %c0_i32, %c0_i32_0 : i32, i32
  }
  func.func @transform_6(%arg0: i32) -> (i32, i32) {
    %c0_i32 = arith.constant 0 : i32
    %c0_i32_0 = arith.constant 0 : i32
    %c0_i32_1 = arith.constant 0 : i32
    return %c0_i32, %c0_i32_0 : i32, i32
  }
  func.func @transform_7(%arg0: i32) -> (i32, i32) {
    %c0_i32 = arith.constant 0 : i32
    %c0_i32_0 = arith.constant 0 : i32
    %c0_i32_1 = arith.constant 0 : i32
    return %c0_i32, %c0_i32_0 : i32, i32
  }
  func.func @transform_8(%arg0: i32) -> (i32, i32) {
    %c0_i32 = arith.constant 0 : i32
    %c0_i32_0 = arith.constant 0 : i32
    %c0_i32_1 = arith.constant 0 : i32
    return %c0_i32, %c0_i32_0 : i32, i32
  }
  func.func @transform_9(%arg0: i32) -> (i32, i32) {
    %c0_i32 = arith.constant 0 : i32
    %c0_i32_0 = arith.constant 0 : i32
    %c0_i32_1 = arith.constant 0 : i32
    return %c0_i32, %c0_i32_0 : i32, i32
  }
  func.func @transform_10(%arg0: i32) -> (i32, i32) {
    %c0_i32 = arith.constant 0 : i32
    %c0_i32_0 = arith.constant 0 : i32
    %c0_i32_1 = arith.constant 0 : i32
    return %c0_i32, %c0_i32_0 : i32, i32
  }
  func.func @transform_11(%arg0: i32) -> (i32, i32) {
    %c0_i32 = arith.constant 0 : i32
    %c0_i32_0 = arith.constant 0 : i32
    %c0_i32_1 = arith.constant 0 : i32
    return %c0_i32, %c0_i32_0 : i32, i32
  }
  func.func @transform_12(%arg0: i32) -> (i32, i32) {
    %c0_i32 = arith.constant 0 : i32
    %c0_i32_0 = arith.constant 0 : i32
    %c0_i32_1 = arith.constant 0 : i32
    return %c0_i32, %c0_i32_0 : i32, i32
  }
  func.func @transform_13(%arg0: i32) -> (i32, i32) {
    %c0_i32 = arith.constant 0 : i32
    %c0_i32_0 = arith.constant 0 : i32
    %c0_i32_1 = arith.constant 0 : i32
    return %c0_i32, %c0_i32_0 : i32, i32
  }
  func.func @transform_14(%arg0: i32) -> (i32, i32) {
    %c0_i32 = arith.constant 0 : i32
    %c0_i32_0 = arith.constant 0 : i32
    %c0_i32_1 = arith.constant 0 : i32
    return %c0_i32, %c0_i32_0 : i32, i32
  }
  func.func @transform_15(%arg0: i32) -> (i32, i32) {
    %c0_i32 = arith.constant 0 : i32
    %c0_i32_0 = arith.constant 0 : i32
    return %arg0, %c0_i32 : i32, i32
  }
}

module attributes {stable_mosaic.version = 11 : i64} {
  func.func @agt_kernel(%arg0: i32, %arg1: memref<8x32xf32, #tpu.memory_space<vmem>>, %arg2: memref<8x32xf32, #tpu.memory_space<vmem>>, %arg3: memref<32x32xf32, #tpu.memory_space<vmem>>, %arg4: memref<1x32xf32, #tpu.memory_space<vmem>>, %arg5: memref<1x32xf32, #tpu.memory_space<vmem>>, %arg6: memref<32x32xf32, #tpu.memory_space<vmem>>, %arg7: memref<1x32xf32, #tpu.memory_space<vmem>>, %arg8: memref<1x32xf32, #tpu.memory_space<vmem>>, %arg9: memref<8x32xf32, #tpu.memory_space<vmem>>) attributes {dimension_semantics = [#tpu.dimension_semantics<parallel>], iteration_bounds = array<i64: 1>, scalar_prefetch = 0 : i64, scratch_operands = 0 : i64, tpu.core_type = #tpu.core_type<tc>, window_params = [{transform_indices = @transform_0, window_bounds = array<i64: 8, 32>}, {transform_indices = @transform_1, window_bounds = array<i64: 8, 32>}, {pipeline_mode = #tpu.pipeline_mode<synchronous>, transform_indices = @transform_2, window_bounds = array<i64: 32, 32>}, {pipeline_mode = #tpu.pipeline_mode<synchronous>, transform_indices = @transform_3, window_bounds = array<i64: 1, 32>}, {pipeline_mode = #tpu.pipeline_mode<synchronous>, transform_indices = @transform_4, window_bounds = array<i64: 1, 32>}, {pipeline_mode = #tpu.pipeline_mode<synchronous>, transform_indices = @transform_5, window_bounds = array<i64: 32, 32>}, {pipeline_mode = #tpu.pipeline_mode<synchronous>, transform_indices = @transform_6, window_bounds = array<i64: 1, 32>}, {pipeline_mode = #tpu.pipeline_mode<synchronous>, transform_indices = @transform_7, window_bounds = array<i64: 1, 32>}, {transform_indices = @transform_8, window_bounds = array<i64: 8, 32>}]} {
    %c0 = arith.constant 0 : index
    %c0_0 = arith.constant 0 : index
    %0 = vector.load %arg1[%c0, %c0_0] : memref<8x32xf32, #tpu.memory_space<vmem>>, vector<8x32xf32>
    %c0_1 = arith.constant 0 : index
    %c0_2 = arith.constant 0 : index
    %1 = vector.load %arg3[%c0_1, %c0_2] : memref<32x32xf32, #tpu.memory_space<vmem>>, vector<32x32xf32>
    %cst = arith.constant dense<0.000000e+00> : vector<8x32xf32>
    %2 = tpu.matmul %0, %1, %cst {dimension_numbers = #tpu.dot_dimension_numbers<[1], [0], [0], [1], [0, 0, 1, 1], [], []>} : vector<8x32xf32>, vector<32x32xf32>, vector<8x32xf32> -> vector<8x32xf32>
    %c0_3 = arith.constant 0 : index
    %c0_4 = arith.constant 0 : index
    %3 = vector.load %arg2[%c0_3, %c0_4] : memref<8x32xf32, #tpu.memory_space<vmem>>, vector<8x32xf32>
    %4 = arith.addf %2, %3 : vector<8x32xf32>
    %c0_5 = arith.constant 0 : index
    %c0_6 = arith.constant 0 : index
    %5 = vector.load %arg4[%c0_5, %c0_6] : memref<1x32xf32, #tpu.memory_space<vmem>>, vector<1x32xf32>
    %c0_7 = arith.constant 0 : index
    %c0_8 = arith.constant 0 : index
    %6 = vector.load %arg5[%c0_7, %c0_8] : memref<1x32xf32, #tpu.memory_space<vmem>>, vector<1x32xf32>
    %cst_9 = arith.constant dense<0.000000e+00> : vector<8xf32>
    %7 = vector.multi_reduction <add>, %4, %cst_9 [1] : vector<8x32xf32> to vector<8xf32>
    %8 = vector.shape_cast %7 : vector<8xf32> to vector<8x1xf32>
    %cst_10 = arith.constant 3.200000e+01 : f32
    %9 = vector.broadcast %cst_10 : f32 to vector<8x1xf32>
    %10 = arith.divf %8, %9 : vector<8x1xf32>
    %11 = vector.broadcast %10 : vector<8x1xf32> to vector<8x32xf32>
    %12 = arith.subf %4, %11 : vector<8x32xf32>
    %13 = arith.mulf %12, %12 : vector<8x32xf32>
    %cst_11 = arith.constant dense<0.000000e+00> : vector<8xf32>
    %14 = vector.multi_reduction <add>, %13, %cst_11 [1] : vector<8x32xf32> to vector<8xf32>
    %15 = vector.shape_cast %14 : vector<8xf32> to vector<8x1xf32>
    %cst_12 = arith.constant 3.200000e+01 : f32
    %16 = vector.broadcast %cst_12 : f32 to vector<8x1xf32>
    %17 = arith.divf %15, %16 : vector<8x1xf32>
    %cst_13 = arith.constant 9.99999974E-6 : f32
    %18 = vector.broadcast %cst_13 : f32 to vector<8x1xf32>
    %19 = arith.addf %17, %18 : vector<8x1xf32>
    %20 = math.rsqrt %19 : vector<8x1xf32>
    %21 = vector.broadcast %20 : vector<8x1xf32> to vector<8x32xf32>
    %22 = arith.mulf %12, %21 : vector<8x32xf32>
    %23 = vector.broadcast %5 : vector<1x32xf32> to vector<8x32xf32>
    %24 = arith.mulf %22, %23 : vector<8x32xf32>
    %25 = vector.broadcast %6 : vector<1x32xf32> to vector<8x32xf32>
    %26 = arith.addf %24, %25 : vector<8x32xf32>
    %cst_14 = arith.constant 0.000000e+00 : f32
    %27 = vector.broadcast %cst_14 : f32 to vector<8x32xf32>
    %28 = arith.maximumf %26, %27 : vector<8x32xf32>
    %c0_15 = arith.constant 0 : index
    %c0_16 = arith.constant 0 : index
    %29 = vector.load %arg6[%c0_15, %c0_16] : memref<32x32xf32, #tpu.memory_space<vmem>>, vector<32x32xf32>
    %cst_17 = arith.constant dense<0.000000e+00> : vector<8x32xf32>
    %30 = tpu.matmul %28, %29, %cst_17 {dimension_numbers = #tpu.dot_dimension_numbers<[1], [0], [0], [1], [0, 0, 1, 1], [], []>} : vector<8x32xf32>, vector<32x32xf32>, vector<8x32xf32> -> vector<8x32xf32>
    %c0_18 = arith.constant 0 : index
    %c0_19 = arith.constant 0 : index
    %31 = vector.load %arg7[%c0_18, %c0_19] : memref<1x32xf32, #tpu.memory_space<vmem>>, vector<1x32xf32>
    %c0_20 = arith.constant 0 : index
    %c0_21 = arith.constant 0 : index
    %32 = vector.load %arg8[%c0_20, %c0_21] : memref<1x32xf32, #tpu.memory_space<vmem>>, vector<1x32xf32>
    %cst_22 = arith.constant dense<0.000000e+00> : vector<8xf32>
    %33 = vector.multi_reduction <add>, %30, %cst_22 [1] : vector<8x32xf32> to vector<8xf32>
    %34 = vector.shape_cast %33 : vector<8xf32> to vector<8x1xf32>
    %cst_23 = arith.constant 3.200000e+01 : f32
    %35 = vector.broadcast %cst_23 : f32 to vector<8x1xf32>
    %36 = arith.divf %34, %35 : vector<8x1xf32>
    %37 = vector.broadcast %36 : vector<8x1xf32> to vector<8x32xf32>
    %38 = arith.subf %30, %37 : vector<8x32xf32>
    %39 = arith.mulf %38, %38 : vector<8x32xf32>
    %cst_24 = arith.constant dense<0.000000e+00> : vector<8xf32>
    %40 = vector.multi_reduction <add>, %39, %cst_24 [1] : vector<8x32xf32> to vector<8xf32>
    %41 = vector.shape_cast %40 : vector<8xf32> to vector<8x1xf32>
    %cst_25 = arith.constant 3.200000e+01 : f32
    %42 = vector.broadcast %cst_25 : f32 to vector<8x1xf32>
    %43 = arith.divf %41, %42 : vector<8x1xf32>
    %cst_26 = arith.constant 9.99999974E-6 : f32
    %44 = vector.broadcast %cst_26 : f32 to vector<8x1xf32>
    %45 = arith.addf %43, %44 : vector<8x1xf32>
    %46 = math.rsqrt %45 : vector<8x1xf32>
    %47 = vector.broadcast %46 : vector<8x1xf32> to vector<8x32xf32>
    %48 = arith.mulf %38, %47 : vector<8x32xf32>
    %49 = vector.broadcast %31 : vector<1x32xf32> to vector<8x32xf32>
    %50 = arith.mulf %48, %49 : vector<8x32xf32>
    %51 = vector.broadcast %32 : vector<1x32xf32> to vector<8x32xf32>
    %52 = arith.addf %50, %51 : vector<8x32xf32>
    %53 = arith.addf %52, %0 : vector<8x32xf32>
    %c0_27 = arith.constant 0 : index
    %c0_28 = arith.constant 0 : index
    %54 = vector.load %arg9[%c0_27, %c0_28] : memref<8x32xf32, #tpu.memory_space<vmem>>, vector<8x32xf32>
    tpu.vector_store %arg9[%c0_27, %c0_28], %53 {strides = array<i32>} : memref<8x32xf32, #tpu.memory_space<vmem>>, vector<8x32xf32>,
    return
  }
  func.func @transform_0(%arg0: i32) -> (i32, i32) {
    %c0_i32 = arith.constant 0 : i32
    %c0_i32_0 = arith.constant 0 : i32
    return %arg0, %c0_i32 : i32, i32
  }
  func.func @transform_1(%arg0: i32) -> (i32, i32) {
    %c0_i32 = arith.constant 0 : i32
    %c0_i32_0 = arith.constant 0 : i32
    return %arg0, %c0_i32 : i32, i32
  }
  func.func @transform_2(%arg0: i32) -> (i32, i32) {
    %c0_i32 = arith.constant 0 : i32
    %c0_i32_0 = arith.constant 0 : i32
    %c0_i32_1 = arith.constant 0 : i32
    return %c0_i32, %c0_i32_0 : i32, i32
  }
  func.func @transform_3(%arg0: i32) -> (i32, i32) {
    %c0_i32 = arith.constant 0 : i32
    %c0_i32_0 = arith.constant 0 : i32
    %c0_i32_1 = arith.constant 0 : i32
    return %c0_i32, %c0_i32_0 : i32, i32
  }
  func.func @transform_4(%arg0: i32) -> (i32, i32) {
    %c0_i32 = arith.constant 0 : i32
    %c0_i32_0 = arith.constant 0 : i32
    %c0_i32_1 = arith.constant 0 : i32
    return %c0_i32, %c0_i32_0 : i32, i32
  }
  func.func @transform_5(%arg0: i32) -> (i32, i32) {
    %c0_i32 = arith.constant 0 : i32
    %c0_i32_0 = arith.constant 0 : i32
    %c0_i32_1 = arith.constant 0 : i32
    return %c0_i32, %c0_i32_0 : i32, i32
  }
  func.func @transform_6(%arg0: i32) -> (i32, i32) {
    %c0_i32 = arith.constant 0 : i32
    %c0_i32_0 = arith.constant 0 : i32
    %c0_i32_1 = arith.constant 0 : i32
    return %c0_i32, %c0_i32_0 : i32, i32
  }
  func.func @transform_7(%arg0: i32) -> (i32, i32) {
    %c0_i32 = arith.constant 0 : i32
    %c0_i32_0 = arith.constant 0 : i32
    %c0_i32_1 = arith.constant 0 : i32
    return %c0_i32, %c0_i32_0 : i32, i32
  }
  func.func @transform_8(%arg0: i32) -> (i32, i32) {
    %c0_i32 = arith.constant 0 : i32
    %c0_i32_0 = arith.constant 0 : i32
    return %arg0, %c0_i32 : i32, i32
  }
}

</mosaic_0001>

<bundles_post_ra>
// kernel: _att_core.3
= control target key start
LH: loop header
LB: loop body
LE: loop exit
PB: predicated region body
PF: predicated region fallthrough
CT: control target
= control target key end

     0   :  { %v345_v3 = vmov 0.0|0.0   ;;  %vm346_vm0 = vmmov 0   ;;  %v347_v6 = vmov 0.0   ;;  %s455_s0 = inlined_call_operand.vmem [shape: f32[8,32], index: 0, kind: input, shape index: {}]   ;;  %s456_s1 = inlined_call_operand.vmem [shape: f32[8,32], index: 1, kind: input, shape index: {}]   ;;  %s457_s2 = inlined_call_operand.vmem [shape: f32[32,32], index: 2, kind: input, shape index: {}]   ;;  %s458_s3 = inlined_call_operand.vmem [shape: f32[1,32], index: 3, kind: input, shape index: {}]   ;;  %s459_s4 = inlined_call_operand.vmem [shape: f32[1,32], index: 4, kind: input, shape index: {}]   ;;  %s460_s5 = inlined_call_operand.vmem [shape: f32[32,32], index: 5, kind: input, shape index: {}]   ;;  %s461_s6 = inlined_call_operand.vmem [shape: f32[1,32], index: 6, kind: input, shape index: {}]   ;;  %s462_s7 = inlined_call_operand.vmem [shape: f32[1,32], index: 7, kind: input, shape index: {}]   ;;  %s463_s8 = inlined_call_operand.hbm [shape: f32[8,32], index: 8, kind: output, shape index: {}]  }
   0x1   :  { %v31_v0 = vld [vmem:[%s457_s2] sm:$0xff]  ;;  %v32_v1 = vld [vmem:[%s457_s2 + $0x8] sm:$0xff]  ;;  %v33_v2 = vld [vmem:[%s457_s2 + $0x10] sm:$0xff]  ;;  %301 = vmatprep.subr.bf16.mxu0 %v345_v3  ;;  %287 = vmatprep.mubr.msk.f32.mxu0 %vm346_vm0, %v347_v6 }
   0x2   :  { %v302_v4 = vpack.c.bf16 %v32_v1, %v31_v0  ;;  %v34_v5 = vld [vmem:[%s457_s2 + $0x18] sm:$0xff]  ;;  %307 = vmatprep.subr.bf16.mxu1 %v345_v3  ;;  %298 = vmatprep.mubr.msk.f32.mxu1 %vm346_vm0, %v347_v6 }
   0x3   :  { %13 = vsyncpa [#allocation3], 0  ;;  %v305_v7 = vpack.c.bf16 %v34_v5, %v33_v2  ;;  %v30_v8 = vld [vmem:[%s455_s0] sm:$0xff]  ;;  %vm36_vm1 = vcmask 261120   ;;  %v142_v20 = vld [vmem:[%s460_s5 + $0x8] sm:$0xff]  ;;  %s348_s27 = smov [#allocation2]  }
   0x4   :  { %303 = vmatpush3.bf16.msra.mxu0 %v302_v4  ;;  %v35_v9 = vld [vmem:[%s456_s1] sm:$0xff]  ;;  %v143_v22 = vld [vmem:[%s460_s5 + $0x10] sm:$0xff]  ;;  %v144_v23 = vld [vmem:[%s460_s5 + $0x18] sm:$0xff]  ;;  %s255_s28 = sshll.u32 %s348_s27, 4  ;;  %s256_s28 = int_to_ptr.vmem [resolvable:$true] %s255_s28 }
   0x5   :  { %304 = vmatprep.subr.bf16.mxu0 %v345_v3  ;;  %v141_v19 = vld [vmem:[%s460_s5] sm:$0xff]  ;;  %v311_v24 = vpack.c.bf16 %v144_v23, %v143_v22  ;;  %s321_s29 = scalar_lea.vmem %s256_s28, 128  ;;  %p326_p1 = scmp.lt.s32.totalorder %s256_s28, %s256_s28 }
   0x6   :  { %v308_v21 = vpack.c.bf16 %v142_v20, %v141_v19  ;;  %v264_v29 = vld [vmem:[%s458_s3] ss:$0 sm:$0xff]  ;;  %p322_p0 = scmp.ne.s32.totalorder %s256_s28, %s321_s29  ;;  %p327_p2 = scmp.lt.s32.totalorder %s321_s29, %s321_s29 }
   0x7   :  { %v265_v31 = vld [vmem:[%s459_s4] ss:$0 sm:$0xff] }
   0x8   :  { %306 = vmatpush3.bf16.msra.mxu0 %v305_v7  ;;  %309 = vmatpush3.bf16.msra.mxu1 %v308_v21  ;;  %v267_v47 = vld [vmem:[%s461_s6] ss:$0 sm:$0xff]  ;;  %p328_p3 = por %p327_p2, %p326_p1 }
   0x9   :  { %310 = vmatprep.subr.bf16.mxu1 %v345_v3  ;;  %v268_v49 = vld [vmem:[%s462_s7] ss:$0 sm:$0xff] }
   0xa   :  { %p329_p4 = pnand %p328_p3, %p322_p0 }
   0xb   :  { %288 = vmatmul.mubr.msk.f32.vlgmr.msra.gmra.mrb[0].mxu0 %vm36_vm1, %v30_v8 }
   0xc   :  { %312 = vmatpush3.bf16.msra.mxu1 %v311_v24 }
  0xde   :  { %v106_v10 = vpop.f32.mrb[0].mxu0 }
  0xdf   :  { %v107_v11 = vadd.f32 %v106_v10, %v35_v9  ;;  %v289_v12 = vpop.f32.mrb[1].mxu0 }
  0xe1   :  { %v112_v13 = vsel %vm36_vm1, %v107_v11, 0.0 }
  0xe2   :  { %113 = vadd.xlane.f32.xlu0 %v112_v13 }
 0x16f   :  { %v114_v14 = vpop.xlane.xlu0 %113 }
 0x170   :  { %v116_v15 = vmul.f32 0.03125, %v114_v14 }
 0x172   :  { %v117_v16 = vsub.f32 %v107_v11, %v116_v15 }
 0x174   :  { %v118_v17 = vmul.f32 %v117_v16, %v117_v16 }
 0x176   :  { %v119_v18 = vsel %vm36_vm1, %v118_v17, 0.0 }
 0x177   :  { %120 = vadd.xlane.f32.xlu0 %v119_v18 }
 0x204   :  { %v121_v25 = vpop.xlane.xlu0 %120 }
 0x205   :  { %v122_v26 = vmul.f32 0.03125, %v121_v25 }
 0x207   :  { %v123_v27 = vadd.f32 1e-05, %v122_v26 }
 0x209   :  { %317 = vrsqrt.f32 %v123_v27 }
 0x213   :  { %v318_v28 = vpop.eup %317 }
 0x214   :  { %v125_v30 = vmul.f32 %v318_v28, %v117_v16 }
 0x216   :  { %v132_v32 = vmul.f32 %v264_v29, %v125_v30 }
 0x218   :  { %v139_v33 = vadd.f32 %v265_v31, %v132_v32 }
 0x21a   :  { %v140_v34 = vmax.f32 %v139_v33, 0.0 }
 0x21c   :  { %299 = vmatmul.mubr.msk.f32.vlgmr.msra.gmra.mrb[0].mxu1 %vm36_vm1, %v140_v34 }
 0x2ef   :  { %v214_v35 = vpop.f32.mrb[0].mxu1 }
 0x2f0   :  { %v300_v36 = vpop.f32.mrb[1].mxu1  ;;  %v220_v37 = vsel %vm36_vm1, %v214_v35, 0.0 }
 0x2f1   :  { %221 = vadd.xlane.f32.xlu1 %v220_v37 }
 0x37e   :  { %v222_v38 = vpop.xlane.xlu1 %221 }
 0x37f   :  { %v223_v39 = vmul.f32 0.03125, %v222_v38 }
 0x381   :  { %v224_v40 = vsub.f32 %v214_v35, %v223_v39 }
 0x383   :  { %v225_v41 = vmul.f32 %v224_v40, %v224_v40 }
 0x385   :  { %v226_v42 = vsel %vm36_vm1, %v225_v41, 0.0 }
 0x386   :  { %227 = vadd.xlane.f32.xlu1 %v226_v42 }
 0x413   :  { %v228_v43 = vpop.xlane.xlu1 %227 }
 0x414   :  { %v229_v44 = vmul.f32 0.03125, %v228_v43 }
 0x416   :  { %v230_v45 = vadd.f32 1e-05, %v229_v44 }
 0x418   :  { %319 = vrsqrt.f32 %v230_v45 }
 0x422   :  { %v320_v46 = vpop.eup %319 }
 0x423   :  { %v232_v48 = vmul.f32 %v320_v46, %v224_v40 }
 0x425   :  { %v239_v50 = vmul.f32 %v267_v47, %v232_v48 }
 0x427   :  { %v246_v51 = vadd.f32 %v268_v49, %v239_v50 }
 0x429   :  { %v247_v52 = vadd.f32 %v246_v51, %v30_v8 }
 0x42b   :  { %248 = vst.msk [vmem:[#allocation2] sm:$0xff] %vm36_vm1, %v247_v52 }
 0x42c   :  { %332 = shalt.err (!%p329_p4)
}
 0x42d   :  { %s333_s9 = scalar_lea.hbm %s463_s8, 128 }
 0x42e   :  { %p334_p5 = scmp.ne.s32.totalorder %s463_s8, %s333_s9  ;;  %p337_p6 = scmp.lt.u32.totalorder %s333_s9, %s463_s8 }
 0x430   :  { %p339_p7 = pnand %p337_p6, %p334_p5 }
 0x432   :  { %342 = shalt.err (!%p339_p7)
}
 0x433   :  { %258 = dma.vmem_to_hbm [thread:$0]  %s256_s28, 128, %s463_s8, [#allocation3]  }
 0x434   :  { %343 = dma.done.wait [#allocation3], 128  }
 0x435   :  { %344 = vsyncadd [#allocation3], 4294967168 }
 0x436   :  { %262 = vsyncpa [#allocation3], 1 }

// kernel: _att_core.2
= control target key start
LH: loop header
LB: loop body
LE: loop exit
PB: predicated region body
PF: predicated region fallthrough
CT: control target
= control target key end

     0   :  { %s1467_s18 = smov 0   ;;  %s1632_s0 = inlined_call_operand.vmem [shape: f32[64,2], index: 0, kind: input, shape index: {}]   ;;  %s1633_s1 = inlined_call_operand.vmem [shape: f32[64,32], index: 1, kind: input, shape index: {}]   ;;  %s1634_s2 = inlined_call_operand.vmem [shape: f32[64,32], index: 2, kind: input, shape index: {}]   ;;  %s1635_s3 = inlined_call_operand.vmem [shape: f32[2,32], index: 3, kind: input, shape index: {}]   ;;  %s1636_s4 = inlined_call_operand.vmem [shape: f32[1,32], index: 4, kind: input, shape index: {}]   ;;  %s1637_s5 = inlined_call_operand.vmem [shape: f32[32,32], index: 5, kind: input, shape index: {}]   ;;  %s1638_s6 = inlined_call_operand.vmem [shape: f32[1,32], index: 6, kind: input, shape index: {}]   ;;  %s1639_s7 = inlined_call_operand.vmem [shape: f32[1,32], index: 7, kind: input, shape index: {}]   ;;  %s1640_s8 = inlined_call_operand.vmem [shape: f32[32,32], index: 8, kind: input, shape index: {}]   ;;  %s1641_s9 = inlined_call_operand.vmem [shape: f32[1,32], index: 9, kind: input, shape index: {}]   ;;  %s1642_s10 = inlined_call_operand.vmem [shape: f32[1,32], index: 10, kind: input, shape index: {}]   ;;  %s1643_s11 = inlined_call_operand.vmem [shape: f32[96,32], index: 11, kind: input, shape index: {}]   ;;  %s1644_s12 = inlined_call_operand.vmem [shape: f32[1,32], index: 12, kind: input, shape index: {}]   ;;  %s1645_s13 = inlined_call_operand.vmem [shape: f32[1,32], index: 13, kind: input, shape index: {}]   ;;  %s1646_s14 = inlined_call_operand.vmem [shape: f32[32,32], index: 14, kind: input, shape index: {}]   ;;  %s1647_s15 = inlined_call_operand.vmem [shape: f32[64,32], index: 15, kind: output, shape index: {}]  }
   0x1 LB: > { %s1191_s19 = sadd.s32 4294967295, %s1380_s18   ;;  %p1195_p0 = scmp.ge.s32.totalorder %s1380_s18, 1  ;;  %s1380_s18 = sphi %s1467_s18, %s25_s18  }
   0x2   : > { %p454_p1 = scmp.lt.s32.totalorder %s1380_s18, 9 }
   0x4   : > { %p455_p2 = pnand %p1195_p0, %p454_p1 }
   0x5   : > { %p508_p3 = scmp.lt.s32.totalorder (!%p455_p2), %s1191_s19, 7  ;;  %v1382_v0 = vmov (!%p455_p2), 0   ;;  %v1383_v2 = vmov (!%p455_p2), 0.0|0.0   ;;  %v556_v3 = vld [vmem:[%s1637_s5] sm:$0xff] (!%p455_p2)  ;;  %v557_v4 = vld [vmem:[%s1637_s5 + $0x8] sm:$0xff] (!%p455_p2)  ;;  %v1384_v6 = vmov (!%p455_p2), 1  }
   0x6   : > { %458 = sbr.rel (%p455_p2) target bundleno = 1449 (0x5a9), region = 80  ;;  %1366 = vset.pattern.permute.xlu0 (!%p455_p2), %v1382_v0  ;;  %1313 = vmatprep.subr.bf16.mxu1 (!%p455_p2), %v1383_v2  ;;  %v1314_v5 = vpack.c.bf16 (!%p455_p2), %v557_v4, %v556_v3  ;;  %v558_v7 = vld [vmem:[%s1637_s5 + $0x10] sm:$0xff] (!%p455_p2)  ;;  %v559_v8 = vld [vmem:[%s1637_s5 + $0x18] sm:$0xff] (!%p455_p2)  ;;  %vm1385_vm0 = vmmov (!%p455_p2), 0   ;;  %v1386_v10 = vmov (!%p455_p2), 0.0   ;;  %v666_v19 = vld [vmem:[%s1640_s8] sm:$0xff] (!%p455_p2) }
   0x7   : > { %1325 = vmatprep.subr.bf16.mxu0 (!%p455_p2), %v1383_v2  ;;  %v1317_v9 = vpack.c.bf16 (!%p455_p2), %v559_v8, %v558_v7  ;;  %1255 = vmatprep.mubr.msk.f32.mxu1 (!%p455_p2), %vm1385_vm0, %v1386_v10  ;;  %v1200_v12 = vld [vmem:[%s1635_s3] ss:$0 sm:$0xff] (!%p455_p2)  ;;  %v1201_v13 = vld [vmem:[%s1635_s3 + $0x1] ss:$0 sm:$0xff] (!%p455_p2)  ;;  %v667_v20 = vld [vmem:[%s1640_s8 + $0x8] sm:$0xff] (!%p455_p2)  ;;  %vm560_vm1 = vcmask (!%p455_p2), 261120  }
   0x8   : > { %1315 = vmatpush3.bf16.msra.mxu1 (!%p455_p2), %v1314_v5  ;;  %1277 = vmatprep.mubr.msk.f32.mxu0 (!%p455_p2), %vm1385_vm0, %v1386_v10  ;;  %v1202_v17 = vld [vmem:[%s1636_s4] ss:$0 sm:$0xff] (!%p455_p2)  ;;  %v1320_v22 = vpack.c.bf16 (!%p455_p2), %v667_v20, %v666_v19  ;;  %v668_v24 = vld [vmem:[%s1640_s8 + $0x10] sm:$0xff] (!%p455_p2)  ;;  %v669_v25 = vld [vmem:[%s1640_s8 + $0x18] sm:$0xff] (!%p455_p2) }
   0x9   : > { %1316 = vmatprep.subr.bf16.mxu1 (!%p455_p2), %v1383_v2  ;;  %v1323_v26 = vpack.c.bf16 (!%p455_p2), %v669_v25, %v668_v24  ;;  %v777_v44 = vld [vmem:[%s1643_s11 + $0x20] sm:$0xff] (!%p455_p2)  ;;  %v778_v45 = vld [vmem:[%s1643_s11 + $0x28] sm:$0xff] (!%p455_p2)  ;;  %v779_v47 = vld [vmem:[%s1643_s11 + $0x30] sm:$0xff] (!%p455_p2) }
   0xa   : > { %v1326_v46 = vpack.c.bf16 (!%p455_p2), %v778_v45, %v777_v44  ;;  %v780_v48 = vld [vmem:[%s1643_s11 + $0x38] sm:$0xff] (!%p455_p2)  ;;  %v1207_v57 = vld [vmem:[%s1641_s9] ss:$0 sm:$0xff] (!%p455_p2)  ;;  %v774_v62 = vld [vmem:[%s1643_s11 + $0x8] sm:$0xff] (!%p455_p2) }
   0xb   : > { %v1329_v49 = vpack.c.bf16 (!%p455_p2), %v780_v48, %v779_v47  ;;  %v1208_v59 = vld [vmem:[%s1642_s10] ss:$0 sm:$0xff] (!%p455_p2)  ;;  %v775_v7 = vld [vmem:[%s1643_s11 + $0x10] sm:$0xff] (!%p455_p2)  ;;  %v776_v8 = vld [vmem:[%s1643_s11 + $0x18] sm:$0xff] (!%p455_p2) }
   0xc   : > { %1318 = vmatpush3.bf16.msra.mxu1 (!%p455_p2), %v1317_v9  ;;  %1327 = vmatpush3.bf16.msra.mxu0 (!%p455_p2), %v1326_v46  ;;  %v773_v61 = vld [vmem:[%s1643_s11] sm:$0xff] (!%p455_p2) }
   0xd   : > { %s1649_s19 = smov (!%p508_p3, %s1191_s19), 7  ;;  %1319 = vmatprep.subr.bf16.mxu1 %v1383_v2  ;;  %1328 = vmatprep.subr.bf16.mxu0 %v1383_v2  ;;  %v1204_v0 = vld [vmem:[%s1638_s6] ss:$0 sm:$0xff]  ;;  %v1332_v4 = vpack.c.bf16 %v774_v62, %v773_v61 }
   0xe   : > { %s1475_s20 = sshll.u32 %s1649_s19, 3  ;;  %v1205_v9 = vld [vmem:[%s1639_s7] ss:$0 sm:$0xff] }
   0xf   : > { %s511_s23 = scalar_lea.vmem %s1632_s0, %s1475_s20  ;;  %s515_s22 = scalar_lea.vmem %s1633_s1, %s1475_s20 }
  0x10   : > { %v524_v1 = vld [vmem:[%s511_s23] sm:$0xff]  ;;  %1330 = vmatpush3.bf16.msra.mxu0 %v1329_v49  ;;  %s519_s16 = scalar_lea.vmem %s1634_s2, %s1475_s20  ;;  %s523_s19 = scalar_lea.vmem %s1647_s15, %s1475_s20 }
  0x11   : > { %528 = vperm.xlu0 %1366, %v524_v1   ;;  %v665_v27 = vld [vmem:[%s515_s22] sm:$0xff]  ;;  %1331 = vmatprep.subr.bf16.mxu0 %v1383_v2 }
  0x12   : > { %v931_v20 = vld [vmem:[%s519_s16] sm:$0xff] }
  0x15   : > { %1367 = vset.pattern.permute.xlu0 %v1384_v6 }
  0x16   : > { %538 = vperm.xlu0 %1367, %v524_v1  }
  0x90   : > { %v529_v11 = vpop.permute.xlu0 %528 }
  0x91   : > { %v535_v15 = vmul.f32 %v1200_v12, %v529_v11  ;;  %v1335_v11 = vpack.c.bf16 %v776_v8, %v775_v7 }
  0x95   : > { %v539_v14 = vpop.permute.xlu0 %538 }
  0x96   : > { %v545_v16 = vmul.f32 %v1201_v13, %v539_v14  ;;  %v781_v13 = vld [vmem:[%s1643_s11 + $0x40] sm:$0xff]  ;;  %v782_v14 = vld [vmem:[%s1643_s11 + $0x48] sm:$0xff] }
  0x98   : > { %v546_v18 = vadd.f32 %v545_v16, %v535_v15  ;;  %v1338_v15 = vpack.c.bf16 %v782_v14, %v781_v13 }
  0x9a   : > { %v554_v21 = vadd.f32 %v1202_v17, %v546_v18  ;;  %v783_v17 = vld [vmem:[%s1643_s11 + $0x50] sm:$0xff]  ;;  %v784_v18 = vld [vmem:[%s1643_s11 + $0x58] sm:$0xff] }
  0x9b   : > { %v1341_v19 = vpack.c.bf16 %v784_v18, %v783_v17 }
  0x9c   : > { %v555_v23 = vmax.f32 %v554_v21, 0.0 }
  0x9e   : > { %1256 = vmatmul.mubr.msk.f32.vlgmr.msra.gmra.mrb[0].mxu1 %vm560_vm1, %v555_v23 }
  0x9f   : > { %1321 = vmatpush3.bf16.msra.mxu1 %v1320_v22  ;;  %1266 = vmatprep.mubr.msk.f32.mxu1 %vm1385_vm0, %v1386_v10 }
  0xa0   : > { %1322 = vmatprep.subr.bf16.mxu1 %v1383_v2 }
  0xa3   : > { %1324 = vmatpush3.bf16.msra.mxu1 %v1323_v26 }
  0xa4   : > { %1343 = vmatprep.subr.bf16.mxu1 %v1383_v2 }
  0xa6   : > { %1267 = vmatmul.mubr.msk.f32.vlgmr.msra.gmra.mrb[2].mxu1 %vm560_vm1, %v665_v27 }
  0xa7   : > { %1310 = vmatprep.mubr.msk.f32.mxu1 %vm1385_vm0, %v1386_v10 }
 0x171   : > { %v630_v28 = vpop.f32.mrb[0].mxu1 }
 0x172   : > { %v1257_v29 = vpop.f32.mrb[1].mxu1  ;;  %v636_v33 = vsel %vm560_vm1, %v630_v28, 0.0 }
 0x173   : > { %v1037_v29 = vld [vmem:[%s1646_s14 + $0x8] sm:$0xff] }
 0x179   : > { %v739_v30 = vpop.f32.mrb[2].mxu1 }
 0x17a   : > { %v1268_v31 = vpop.f32.mrb[3].mxu1  ;;  %v745_v32 = vsel %vm560_vm1, %v739_v30, 0.0 }
 0x17b   : > { %746 = vadd.xlane.f32.xlu1 %v745_v32  ;;  %v1038_v31 = vld [vmem:[%s1646_s14 + $0x10] sm:$0xff]  ;;  %v1039_v32 = vld [vmem:[%s1646_s14 + $0x18] sm:$0xff] }
 0x17f   : > { %637 = vadd.xlane.f32.xlu1 %v636_v33  ;;  %v1347_v33 = vpack.c.bf16 %v1039_v32, %v1038_v31 }
 0x208   : > { %v747_v34 = vpop.xlane.xlu1 %746 }
 0x209   : > { %v748_v35 = vmul.f32 0.03125, %v747_v34 }
 0x20b   : > { %v749_v36 = vsub.f32 %v739_v30, %v748_v35 }
 0x20c   : > { %v638_v37 = vpop.xlane.xlu1 %637 }
 0x20d   : > { %v640_v38 = vmul.f32 0.03125, %v638_v37  ;;  %v750_v39 = vmul.f32 %v749_v36, %v749_v36 }
 0x20f   : > { %v641_v40 = vsub.f32 %v630_v28, %v640_v38  ;;  %v751_v41 = vsel %vm560_vm1, %v750_v39, 0.0  ;;  %v1036_v28 = vld [vmem:[%s1646_s14] sm:$0xff] }
 0x210   : > { %752 = vadd.xlane.f32.xlu1 %v751_v41  ;;  %v1344_v30 = vpack.c.bf16 %v1037_v29, %v1036_v28  ;;  %v1213_v39 = vld [vmem:[%s1645_s13] ss:$0 sm:$0xff] }
 0x211   : > { %v642_v42 = vmul.f32 %v641_v40, %v641_v40 }
 0x212   : > { %1345 = vmatpush3.bf16.msra.mxu1 %v1344_v30 }
 0x213   : > { %v643_v43 = vsel %vm560_vm1, %v642_v42, 0.0  ;;  %1346 = vmatprep.subr.bf16.mxu1 %v1383_v2 }
 0x214   : > { %644 = vadd.xlane.f32.xlu0 %v643_v43 }
 0x216   : > { %1348 = vmatpush3.bf16.msra.mxu1 %v1347_v33 }
 0x29d   : > { %v753_v50 = vpop.xlane.xlu1 %752 }
 0x29e   : > { %v754_v51 = vmul.f32 0.03125, %v753_v50 }
 0x2a0   : > { %v755_v52 = vadd.f32 1e-05, %v754_v51 }
 0x2a1   : > { %v645_v53 = vpop.xlane.xlu0 %644 }
 0x2a2   : > { %1368 = vrsqrt.f32 %v755_v52  ;;  %v646_v54 = vmul.f32 0.03125, %v645_v53 }
 0x2a4   : > { %v647_v55 = vadd.f32 1e-05, %v646_v54 }
 0x2a6   : > { %1370 = vrsqrt.f32 %v647_v55 }
 0x2ac   : > { %v1369_v56 = vpop.eup %1368 }
 0x2ad   : > { %v757_v58 = vmul.f32 %v1369_v56, %v749_v36 }
 0x2af   : > { %v764_v60 = vmul.f32 %v1207_v57, %v757_v58 }
 0x2b0   : > { %v1371_v63 = vpop.eup %1370 }
 0x2b1   : > { %v649_v1 = vmul.f32 %v1371_v63, %v641_v40  ;;  %v771_v3 = vadd.f32 %v1208_v59, %v764_v60 }
 0x2b3   : > { %v656_v5 = vmul.f32 %v1204_v0, %v649_v1  ;;  %v772_v6 = vmax.f32 %v771_v3, 0.0 }
 0x2b5   : > { %1278 = vmatmul.mubr.msk.f32.vlgmr.msra.gmra.mrb[0].mxu0 %vm560_vm1, %v772_v6  ;;  %v663_v12 = vadd.f32 %v1205_v9, %v656_v5 }
 0x2b6   : > { %1333 = vmatpush3.bf16.msra.mxu0 %v1332_v4  ;;  %1288 = vmatprep.mubr.msk.f32.mxu0 %vm1385_vm0, %v1386_v10 }
 0x2b7   : > { %1334 = vmatprep.subr.bf16.mxu0 %v1383_v2  ;;  %v664_v16 = vmax.f32 %v663_v12, 0.0 }
 0x2ba   : > { %1336 = vmatpush3.bf16.msra.mxu0 %v1335_v11 }
 0x2bb   : > { %1337 = vmatprep.subr.bf16.mxu0 %v1383_v2 }
 0x2bd   : > { %1289 = vmatmul.mubr.msk.f32.vlgmr.msra.gmra.mrb[0].mxu0 %vm560_vm1, %v664_v16 }
 0x2be   : > { %1339 = vmatpush3.bf16.msra.mxu0 %v1338_v15  ;;  %1299 = vmatprep.mubr.msk.f32.mxu0 %vm1385_vm0, %v1386_v10 }
 0x2bf   : > { %1340 = vmatprep.subr.bf16.mxu0 %v1383_v2  ;;  %v1212_v2 = vld [vmem:[%s1644_s12] ss:$0 sm:$0xff] }
 0x2c2   : > { %1342 = vmatpush3.bf16.msra.mxu0 %v1341_v19 }
 0x2c5   : > { %1300 = vmatmul.mubr.msk.f32.vlgmr.msra.gmra.mrb[0].mxu0 %vm560_vm1, %v931_v20 }
 0x398   : > { %v1001_v21 = vpop.f32.mrb[0].mxu0 }
 0x399   : > { %v1301_v22 = vpop.f32.mrb[1].mxu0  ;;  %v1008_v23 = vsel %vm560_vm1, %v1001_v21, 0.0 }
 0x39a   : > { %1009 = vadd.xlane.f32.xlu1 %v1008_v23 }
 0x427   : > { %v1010_v24 = vpop.xlane.xlu1 %1009 }
 0x428   : > { %v1011_v25 = vmul.f32 0.03125, %v1010_v24 }
 0x42a   : > { %v1012_v26 = vsub.f32 %v1001_v21, %v1011_v25 }
 0x42c   : > { %v1013_v27 = vmul.f32 %v1012_v26, %v1012_v26 }
 0x42e   : > { %v1014_v10 = vsel %vm560_vm1, %v1013_v27, 0.0 }
 0x42f   : > { %1015 = vadd.xlane.f32.xlu1 %v1014_v10 }
 0x4bc   : > { %v1016_v34 = vpop.xlane.xlu1 %1015 }
 0x4bd   : > { %v1017_v35 = vmul.f32 0.03125, %v1016_v34 }
 0x4bf   : > { %v1018_v36 = vadd.f32 1e-05, %v1017_v35 }
 0x4c1   : > { %1372 = vrsqrt.f32 %v1018_v36 }
 0x4cb   : > { %v1373_v37 = vpop.eup %1372 }
 0x4cc   : > { %v1020_v38 = vmul.f32 %v1373_v37, %v1012_v26 }
 0x4ce   : > { %v1027_v40 = vmul.f32 %v1212_v2, %v1020_v38 }
 0x4d0   : > { %v1034_v41 = vadd.f32 %v1213_v39, %v1027_v40 }
 0x4d2   : > { %v1035_v42 = vmax.f32 %v1034_v41, 0.0 }
 0x4d4   : > { %1311 = vmatmul.mubr.msk.f32.vlgmr.msra.gmra.mrb[4].mxu1 %vm560_vm1, %v1035_v42 }
 0x5a7   : > { %v1109_v43 = vpop.f32.mrb[4].mxu1 }
 0x5a8   : > { %1113 = vst.msk [vmem:[%s523_s19] sm:$0xff] %vm560_vm1, %v1109_v43  ;;  %v1312_v44 = vpop.f32.mrb[5].mxu1 }
 0x5a9 PF: > { %s25_s18 = sadd.s32 1, %s1380_s18  }
 0x5aa   : > { %p22_p4 = scmp.ge.s32.totalorder %s25_s18, 10  }
 0x5ac   :  { %24 = sbr.rel (!%p22_p4) target bundleno = 1 (0x1), region = 116 }

</bundles_post_ra>
